<compile_context>
chip_gen: v7x
topology: tpu7x:2x2x1
jax: 0.10.0
libtpu: 0.0.40
codegen_flags: <defaults>
</compile_context>

<pallas_src>
import functools

import jax
import jax.numpy as jnp
from jax import lax
from jax.experimental import pallas as pl
from jax.experimental.pallas import tpu as pltpu

_LANES = 128


def _round_up(x, m):
    return (x + m - 1) // m * m


def _vmem_headroom_cap():
    """Physical VMEM per core minus headroom for compiler scratch/semaphores."""
    cap = 64 << 20
    try:
        info = pltpu.get_tpu_info()
        cap = int(getattr(info, "vmem_capacity_bytes", cap))
    except Exception:
        pass
    return max(16 << 20, (3 * cap) // 4)          # never ask for the full VMEM


def _vmem_limit(bytes_needed):
    return int(min(max(int(bytes_needed) + (4 << 20), 8 << 20),
                   _vmem_headroom_cap()))


def _pick_batch_tile(n, per_image_bytes, target_bytes=8 << 20):
    """Images per pass-2 grid step: big streaming blocks, but keep >= 2 grid
    steps when possible so the 'parallel' axis splits across 2 TCs (v7x)."""
    if n <= 1:
        return 1
    tb = max(1, min(n // 2, int(target_bytes // max(int(per_image_bytes), 1))))
    while n % tb:
        tb -= 1
    return max(tb, 1)


def _fused_conv_relu_stats_kernel(x_ref, w_ref, b_ref, act_ref, stats_ref,
                                  *, ho, wo, n_out):
    """Pass 1 -- one image per grid step.

    x_ref:     (1, Hh, Wh, Kp)   space-to-depth padded input (Kp = 4*Cin padded)
    w_ref:     (4, Kp, C_pad)    per-tap fused conv1@conv2 weight (resident)
    b_ref:     (1, C_pad)        fused bias, f32 (resident)
    act_ref:   (1, n_out, R)     ReLU(conv) activations, channel-major, no pad
    stats_ref: (1, 2, n_out)     row 0 = sum, row 1 = sum of squares (f32)
    """
    r = ho * wo
    c_pad = w_ref.shape[-1]
    acc = jnp.zeros((r, c_pad), jnp.float32)
    # stride-2 3x3 conv == stride-1 2x2 conv over the space-to-depth input:
    # 4 per-tap accumulating MXU dots; patches are built in VMEM, never in HBM.
    for di in range(2):
        for dj in range(2):
            patch = x_ref[0, di:di + ho, dj:dj + wo, :]      # (ho, wo, Kp)
            patch2d = patch.reshape(r, patch.shape[-1])      # (R, Kp)
            acc = acc + jnp.dot(patch2d, w_ref[di * 2 + dj],
                                preferred_element_type=jnp.float32)
    act = jnp.maximum(acc + b_ref[...], 0.0)                 # (R, C_pad) f32

    # BatchNorm partials: only the valid channels, only 2 rows (no broadcast).
    av = act[:, :n_out]                                      # (R, n_out)
    s = jnp.sum(av, axis=0, keepdims=True)                   # (1, n_out)
    q = jnp.sum(av * av, axis=0, keepdims=True)              # (1, n_out)
    stats_ref[0] = jnp.concatenate([s, q], axis=0)           # (2, n_out)

    # Channel-major store: lane dim = Ho*Wo, zero channel padding in HBM, and
    # the final NCHW output becomes a free reshape (no XLA transpose epilogue).
    act_t = jnp.transpose(act)[:n_out, :]                    # (n_out, R)
    act_ref[0] = act_t.astype(act_ref.dtype)


def _bn_apply_kernel(act_ref, scale_ref, shift_ref, out_ref):
    """Pass 2: y = act * scale + shift (BatchNorm folded to one FMA/element)."""
    out_ref[...] = (act_ref[...].astype(jnp.float32) * scale_ref[...]
                    + shift_ref[...]).astype(out_ref.dtype)


def transition_block_forward(x_nchw, params, *, stride=2, padding=1, eps=1e-5,
                             compute_dtype=jnp.bfloat16, out_dtype=None):
    """Forward of transition_block: conv3x3/s2 -> conv1x1 -> ReLU -> BatchNorm2d.

    x_nchw: (N, C_in, H, W) float32 (PyTorch NCHW convention).
    Returns (N, n_out, Ho, Wo) in out_dtype (defaults to compute_dtype; keeping
    bf16 downstream halves the post-GEMM HBM traffic, per the perf review).
    """
    w1, b1, w2, b2, gamma, beta = params
    # w1: (KH, KW, C_in, n_mid)  == PyTorch (n_mid, C_in, KH, KW).transpose(2,3,1,0)
    # w2: (n_mid, n_out)         == PyTorch (n_out, n_mid, 1, 1)[..., 0, 0].T
    N, cin, H, W = x_nchw.shape
    KH, KW, _, n_mid = w1.shape
    n_out = w2.shape[1]
    assert (KH, KW) == (3, 3) and stride == 2, "transition_block is 3x3 / stride 2"
    cdt = jnp.dtype(compute_dtype)
    odt = jnp.dtype(out_dtype) if out_dtype is not None else cdt

    Ho = (H + 2 * padding - KH) // stride + 1
    Wo = (W + 2 * padding - KW) // stride + 1
    R = Ho * Wo
    M = N * R
    Hh, Wh = Ho + 1, Wo + 1                       # space-to-depth spatial extents
    k_raw = 4 * cin                               # 2x2 parity * Cin channels
    k_pad = _round_up(k_raw, 16 if cdt.itemsize < 4 else 8)
    c_pad = _round_up(n_out, _LANES)              # lane-dense MXU result (VMEM only)

    # ---- fold conv1 (3x3/s2) and conv2 (1x1) into one per-tap GEMM weight ----
    # NOTE: the fold trades M*K*n_mid + M*n_mid*n_out flops for M*K*n_out; fine
    # while HBM-bound, revisit if a compute-bound configuration appears.
    w_fold = jnp.einsum("ijcm,mf->ijcf", w1.astype(jnp.float32),
                        w2.astype(jnp.float32))                  # (3,3,Cin,n_out)
    b_fused = (b1.astype(jnp.float32) @ w2.astype(jnp.float32)
               + b2.astype(jnp.float32))                         # (n_out,)
    # stride-2 3x3 == stride-1 2x2 over space-to-depth: scatter the 9 taps into
    # (tap_dh, tap_dw, parity_h, parity_w) slots; unused slots stay zero.
    w_s2d = jnp.zeros((2, 2, 2, 2, cin, n_out), jnp.float32)
    for i in range(KH):
        for j in range(KW):
            w_s2d = w_s2d.at[i // 2, j // 2, i % 2, j % 2].set(w_fold[i, j])
    w_s2d = w_s2d.reshape(4, k_raw, n_out)
    w_s2d = jnp.pad(w_s2d, ((0, 0), (0, k_pad - k_raw),
                            (0, c_pad - n_out))).astype(cdt)     # (4, Kp, C_pad)
    b_pad = jnp.pad(b_fused, (0, c_pad - n_out)).reshape(1, c_pad)

    # ---- input glue: NCHW -> padded NHWC -> space-to-depth (one XLA copy) ----
    # TODO(synk): an NHWC-native pipeline (or fusing this rearrangement into the
    # producing layer's output) would remove the remaining input-side XLA copy.
    pad_t, pad_l = padding, padding
    pad_b, pad_r = 2 * Hh - H - padding, 2 * Wh - W - padding
    assert pad_b >= 0 and pad_r >= 0
    xs = jnp.transpose(x_nchw, (0, 2, 3, 1)).astype(cdt)
    xs = jnp.pad(xs, ((0, 0), (pad_t, pad_b), (pad_l, pad_r), (0, 0)))
    xs = xs.reshape(N, Hh, 2, Wh, 2, cin)
    xs = jnp.transpose(xs, (0, 1, 3, 2, 4, 5)).reshape(N, Hh, Wh, k_raw)
    if k_pad > k_raw:
        xs = jnp.pad(xs, ((0, 0), (0, 0), (0, 0), (0, k_pad - k_raw)))

    # ---- pass 1: fused conv+conv+bias+ReLU GEMM + BN partial statistics ----
    per_step1 = (2 * Hh * Wh * k_pad * cdt.itemsize        # x block, double-buffered
                 + 2 * 4 * k_pad * c_pad * cdt.itemsize    # resident fused weight
                 + 2 * c_pad * 4                           # resident bias
                 + 2 * n_out * R * cdt.itemsize            # act out block
                 + 2 * 2 * n_out * 4                       # stats out block
                 + 6 * R * c_pad * 4                       # acc / relu / transpose temps
                 + 2 * R * k_pad * 4)                      # patch temporaries
    flops1 = 2 * M * (4 * k_pad) * c_pad
    bytes1 = (N * Hh * Wh * k_pad * cdt.itemsize + 4 * k_pad * c_pad * cdt.itemsize
              + c_pad * 4 + N * n_out * R * cdt.itemsize + N * 2 * n_out * 4)

    kernel1 = functools.partial(_fused_conv_relu_stats_kernel,
                                ho=Ho, wo=Wo, n_out=n_out)
    act, stats = pl.pallas_call(
        kernel1,
        out_shape=(
            jax.ShapeDtypeStruct((N, n_out, R), cdt),
            jax.ShapeDtypeStruct((N, 2, n_out), jnp.float32),
        ),
        grid_spec=pltpu.PrefetchScalarGridSpec(
            num_scalar_prefetch=0,
            grid=(N,),
            in_specs=[
                pl.BlockSpec((1, Hh, Wh, k_pad), lambda n: (n, 0, 0, 0)),
                # resident weight / bias (constant block index).
                # TODO(synk): pin single-buffering (pl.Buffered(1)) once verified;
                # Mosaic generally does not re-fetch constant-index blocks.
                pl.BlockSpec((4, k_pad, c_pad), lambda n: (0, 0, 0)),
                pl.BlockSpec((1, c_pad), lambda n: (0, 0)),
            ],
            out_specs=[
                pl.BlockSpec((1, n_out, R), lambda n: (n, 0, 0)),
                pl.BlockSpec((1, 2, n_out), lambda n: (n, 0, 0)),
            ],
        ),
        compiler_params=pltpu.CompilerParams(
            dimension_semantics=("parallel",),
            vmem_limit_bytes=_vmem_limit(per_step1),
        ),
        cost_estimate=pl.CostEstimate(flops=flops1, transcendentals=0,
                                      bytes_accessed=bytes1),
    )(xs, w_s2d, b_pad)

    # ---- tiny global combine (training-mode BatchNorm, biased variance) ----
    s_tot = stats[:, 0, :].sum(axis=0)                       # (n_out,)
    q_tot = stats[:, 1, :].sum(axis=0)
    mean = s_tot / M
    var = jnp.maximum(q_tot / M - mean * mean, 0.0)          # clamp cancellation
    inv = lax.rsqrt(var + eps)
    g32 = gamma.astype(jnp.float32)
    scale = (g32 * inv).reshape(n_out, 1)
    shift = (beta.astype(jnp.float32) - mean * g32 * inv).reshape(n_out, 1)
    # TODO(synk): BatchNorm2d running_mean/running_var buffer updates are not
    # emitted (training-side bookkeeping, not part of the forward activation).

    # ---- pass 2: BN affine, channel-major, several images per grid step ----
    per_image2 = n_out * R * (cdt.itemsize + odt.itemsize + 4)
    tb = _pick_batch_tile(N, per_image2)
    per_step2 = 2 * tb * per_image2 + 4 * n_out * 4
    flops2 = 2 * N * n_out * R
    bytes2 = N * n_out * R * (cdt.itemsize + odt.itemsize) + 2 * n_out * 4

    out3d = pl.pallas_call(
        _bn_apply_kernel,
        out_shape=jax.ShapeDtypeStruct((N, n_out, R), odt),
        grid_spec=pltpu.PrefetchScalarGridSpec(
            num_scalar_prefetch=0,
            grid=(N // tb,),
            in_specs=[
                pl.BlockSpec((tb, n_out, R), lambda b: (b, 0, 0)),
                pl.BlockSpec((n_out, 1), lambda b: (0, 0)),   # resident
                pl.BlockSpec((n_out, 1), lambda b: (0, 0)),   # resident
            ],
            out_specs=pl.BlockSpec((tb, n_out, R), lambda b: (b, 0, 0)),
        ),
        compiler_params=pltpu.CompilerParams(
            dimension_semantics=("parallel",),
            vmem_limit_bytes=_vmem_limit(per_step2),
        ),
        cost_estimate=pl.CostEstimate(flops=flops2, transcendentals=0,
                                      bytes_accessed=bytes2),
    )(act, scale, shift)

    # channel-major (N, n_out, Ho*Wo) is already NCHW-contiguous: free reshape.
    return out3d.reshape(N, n_out, Ho, Wo)


def _reference_forward(x_nchw, params, *, stride=2, padding=1, eps=1e-5):
    """Pure-JAX f32 reference (lax convs) used only to validate the kernel."""
    w1, b1, w2, b2, gamma, beta = params
    x = jnp.transpose(x_nchw, (0, 2, 3, 1))
    y = lax.conv_general_dilated(
        x, w1, window_strides=(stride, stride),
        padding=((padding, padding), (padding, padding)),
        dimension_numbers=("NHWC", "HWIO", "NHWC")) + b1
    y = jnp.einsum("nhwc,cf->nhwf", y, w2) + b2
    y = jnp.maximum(y, 0.0)
    mean = jnp.mean(y, axis=(0, 1, 2), keepdims=True)
    var = jnp.mean((y - mean) ** 2, axis=(0, 1, 2), keepdims=True)
    y = (y - mean) * lax.rsqrt(var + eps) * gamma + beta
    return jnp.transpose(y, (0, 3, 1, 2))


def init_params(key, n_in, n_mid, n_out, kernel_size=(3, 3)):
    """Deterministic synthetic parameter init (shapes per the PyTorch module)."""
    k1, k2, k3, k4 = jax.random.split(key, 4)
    kh, kw = kernel_size
    w1 = 0.1 * jax.random.normal(k1, (kh, kw, n_in, n_mid), jnp.float32)
    b1 = 0.1 * jax.random.normal(k2, (n_mid,), jnp.float32)
    w2 = 0.1 * jax.random.normal(k3, (n_mid, n_out), jnp.float32)
    b2 = 0.1 * jax.random.normal(k4, (n_out,), jnp.float32)
    gamma = jnp.ones((n_out,), jnp.float32)          # BatchNorm2d weight init
    beta = jnp.zeros((n_out,), jnp.float32)          # BatchNorm2d bias init
    return (w1, b1, w2, b2, gamma, beta)


if __name__ == "__main__":
    N, n_in, H, W = 2, 4, 16, 16
    n_mid, n_out = 8, 8

    key = jax.random.PRNGKey(0)
    kx, kp = jax.random.split(key)
    x = jax.random.normal(kx, (N, n_in, H, W), jnp.float32)   # NCHW, like PyTorch
    params = init_params(kp, n_in, n_mid, n_out)

    ref = jax.block_until_ready(_reference_forward(x, params))

    # (a) f32 mode for tight numerical validation of the fused s2d-conv + BN.
    out_f32 = jax.block_until_ready(
        transition_block_forward(x, params, compute_dtype=jnp.float32))
    assert out_f32.shape == (N, n_out, H // 2, W // 2), out_f32.shape
    assert jnp.allclose(out_f32.astype(jnp.float32), ref, atol=5e-4, rtol=5e-4), \
        float(jnp.max(jnp.abs(out_f32.astype(jnp.float32) - ref)))

    # (b) bf16 MXU path (f32 accumulation, f32 BN stats, bf16 output); looser
    #     tolerance only because inputs/weights/activations/output are bf16 and
    #     BN divides by a small per-channel std.
    out_bf16 = jax.block_until_ready(
        transition_block_forward(x, params, compute_dtype=jnp.bfloat16))
    assert out_bf16.shape == (N, n_out, H // 2, W // 2), out_bf16.shape
    assert jnp.allclose(out_bf16.astype(jnp.float32), ref, atol=1.5e-1, rtol=1.5e-1), \
        float(jnp.max(jnp.abs(out_bf16.astype(jnp.float32) - ref)))

    print("KERNEL_OK")
</pallas_src>

<mosaic_0001>
module attributes {stable_mosaic.version = 11 : i64} {
  func.func @_fused_conv_relu_stats_kernel(%arg0: i32, %arg1: memref<1x9x9x16xf32, #tpu.memory_space<vmem>>, %arg2: memref<4x16x128xf32, #tpu.memory_space<vmem>>, %arg3: memref<1x128xf32, #tpu.memory_space<vmem>>, %arg4: memref<1x8x64xf32, #tpu.memory_space<vmem>>, %arg5: memref<1x2x8xf32, #tpu.memory_space<vmem>>) attributes {dimension_semantics = [#tpu.dimension_semantics<parallel>], iteration_bounds = array<i64: 2>, scalar_prefetch = 0 : i64, scratch_operands = 0 : i64, tpu.core_type = #tpu.core_type<tc>, window_params = [{transform_indices = @transform_0, window_bounds = array<i64: 1, 9, 9, 16>}, {pipeline_mode = #tpu.pipeline_mode<synchronous>, transform_indices = @transform_1, window_bounds = array<i64: 4, 16, 128>}, {pipeline_mode = #tpu.pipeline_mode<synchronous>, transform_indices = @transform_2, window_bounds = array<i64: 1, 128>}, {transform_indices = @transform_3, window_bounds = array<i64: 1, 8, 64>}, {transform_indices = @transform_4, window_bounds = array<i64: 1, 2, 8>}]} {
    %cst = arith.constant 0.000000e+00 : f32
    %0 = vector.broadcast %cst : f32 to vector<64x128xf32>
    %c0 = arith.constant 0 : index
    %c0_0 = arith.constant 0 : index
    %c0_1 = arith.constant 0 : index
    %c0_2 = arith.constant 0 : index
    %1 = vector.load %arg1[%c0, %c0_0, %c0_1, %c0_2] : memref<1x9x9x16xf32, #tpu.memory_space<vmem>>, vector<1x8x8x16xf32>
    %2 = vector.shape_cast %1 : vector<1x8x8x16xf32> to vector<8x8x16xf32>
    %3 = vector.shape_cast %2 : vector<8x8x16xf32> to vector<64x16xf32>
    %c0_3 = arith.constant 0 : index
    %c0_4 = arith.constant 0 : index
    %c0_5 = arith.constant 0 : index
    %4 = vector.load %arg2[%c0_3, %c0_4, %c0_5] : memref<4x16x128xf32, #tpu.memory_space<vmem>>, vector<1x16x128xf32>
    %5 = vector.shape_cast %4 : vector<1x16x128xf32> to vector<16x128xf32>
    %cst_6 = arith.constant dense<0.000000e+00> : vector<64x128xf32>
    %6 = tpu.matmul %3, %5, %cst_6 {dimension_numbers = #tpu.dot_dimension_numbers<[1], [0], [0], [1], [0, 0, 1, 1], [], []>} : vector<64x16xf32>, vector<16x128xf32>, vector<64x128xf32> -> vector<64x128xf32>
    %7 = arith.addf %0, %6 : vector<64x128xf32>
    %c0_7 = arith.constant 0 : index
    %c0_8 = arith.constant 0 : index
    %c1 = arith.constant 1 : index
    %c0_9 = arith.constant 0 : index
    %8 = vector.load %arg1[%c0_7, %c0_8, %c1, %c0_9] : memref<1x9x9x16xf32, #tpu.memory_space<vmem>>, vector<1x8x8x16xf32>
    %9 = vector.shape_cast %8 : vector<1x8x8x16xf32> to vector<8x8x16xf32>
    %10 = vector.shape_cast %9 : vector<8x8x16xf32> to vector<64x16xf32>
    %c1_10 = arith.constant 1 : index
    %c0_11 = arith.constant 0 : index
    %c0_12 = arith.constant 0 : index
    %11 = vector.load %arg2[%c1_10, %c0_11, %c0_12] : memref<4x16x128xf32, #tpu.memory_space<vmem>>, vector<1x16x128xf32>
    %12 = vector.shape_cast %11 : vector<1x16x128xf32> to vector<16x128xf32>
    %cst_13 = arith.constant dense<0.000000e+00> : vector<64x128xf32>
    %13 = tpu.matmul %10, %12, %cst_13 {dimension_numbers = #tpu.dot_dimension_numbers<[1], [0], [0], [1], [0, 0, 1, 1], [], []>} : vector<64x16xf32>, vector<16x128xf32>, vector<64x128xf32> -> vector<64x128xf32>
    %14 = arith.addf %7, %13 : vector<64x128xf32>
    %c0_14 = arith.constant 0 : index
    %c1_15 = arith.constant 1 : index
    %c0_16 = arith.constant 0 : index
    %c0_17 = arith.constant 0 : index
    %15 = vector.load %arg1[%c0_14, %c1_15, %c0_16, %c0_17] : memref<1x9x9x16xf32, #tpu.memory_space<vmem>>, vector<1x8x8x16xf32>
    %16 = vector.shape_cast %15 : vector<1x8x8x16xf32> to vector<8x8x16xf32>
    %17 = vector.shape_cast %16 : vector<8x8x16xf32> to vector<64x16xf32>
    %c2 = arith.constant 2 : index
    %c0_18 = arith.constant 0 : index
    %c0_19 = arith.constant 0 : index
    %18 = vector.load %arg2[%c2, %c0_18, %c0_19] : memref<4x16x128xf32, #tpu.memory_space<vmem>>, vector<1x16x128xf32>
    %19 = vector.shape_cast %18 : vector<1x16x128xf32> to vector<16x128xf32>
    %cst_20 = arith.constant dense<0.000000e+00> : vector<64x128xf32>
    %20 = tpu.matmul %17, %19, %cst_20 {dimension_numbers = #tpu.dot_dimension_numbers<[1], [0], [0], [1], [0, 0, 1, 1], [], []>} : vector<64x16xf32>, vector<16x128xf32>, vector<64x128xf32> -> vector<64x128xf32>
    %21 = arith.addf %14, %20 : vector<64x128xf32>
    %c0_21 = arith.constant 0 : index
    %c1_22 = arith.constant 1 : index
    %c1_23 = arith.constant 1 : index
    %c0_24 = arith.constant 0 : index
    %22 = vector.load %arg1[%c0_21, %c1_22, %c1_23, %c0_24] : memref<1x9x9x16xf32, #tpu.memory_space<vmem>>, vector<1x8x8x16xf32>
    %23 = vector.shape_cast %22 : vector<1x8x8x16xf32> to vector<8x8x16xf32>
    %24 = vector.shape_cast %23 : vector<8x8x16xf32> to vector<64x16xf32>
    %c3 = arith.constant 3 : index
    %c0_25 = arith.constant 0 : index
    %c0_26 = arith.constant 0 : index
    %25 = vector.load %arg2[%c3, %c0_25, %c0_26] : memref<4x16x128xf32, #tpu.memory_space<vmem>>, vector<1x16x128xf32>
    %26 = vector.shape_cast %25 : vector<1x16x128xf32> to vector<16x128xf32>
    %cst_27 = arith.constant dense<0.000000e+00> : vector<64x128xf32>
    %27 = tpu.matmul %24, %26, %cst_27 {dimension_numbers = #tpu.dot_dimension_numbers<[1], [0], [0], [1], [0, 0, 1, 1], [], []>} : vector<64x16xf32>, vector<16x128xf32>, vector<64x128xf32> -> vector<64x128xf32>
    %28 = arith.addf %21, %27 : vector<64x128xf32>
    %c0_28 = arith.constant 0 : index
    %c0_29 = arith.constant 0 : index
    %29 = vector.load %arg3[%c0_28, %c0_29] : memref<1x128xf32, #tpu.memory_space<vmem>>, vector<1x128xf32>
    %30 = vector.broadcast %29 : vector<1x128xf32> to vector<64x128xf32>
    %31 = arith.addf %28, %30 : vector<64x128xf32>
    %cst_30 = arith.constant 0.000000e+00 : f32
    %32 = vector.broadcast %cst_30 : f32 to vector<64x128xf32>
    %33 = arith.maximumf %31, %32 : vector<64x128xf32>
    %34 = vector.extract_strided_slice %33 {offsets = [0, 0], sizes = [64, 8], strides = [1, 1]} : vector<64x128xf32> to vector<64x8xf32>
    %cst_31 = arith.constant dense<0.000000e+00> : vector<8xf32>
    %35 = vector.multi_reduction <add>, %34, %cst_31 [0] : vector<64x8xf32> to vector<8xf32>
    %36 = vector.shape_cast %35 : vector<8xf32> to vector<1x8xf32>
    %37 = arith.mulf %34, %34 : vector<64x8xf32>
    %cst_32 = arith.constant dense<0.000000e+00> : vector<8xf32>
    %38 = vector.multi_reduction <add>, %37, %cst_32 [0] : vector<64x8xf32> to vector<8xf32>
    %39 = vector.shape_cast %38 : vector<8xf32> to vector<1x8xf32>
    %40 = tpu.concatenate %36, %39 in 0 : vector<1x8xf32>, vector<1x8xf32> -> vector<2x8xf32>
    %c0_33 = arith.constant 0 : index
    %c0_34 = arith.constant 0 : index
    %c0_35 = arith.constant 0 : index
    %41 = vector.load %arg5[%c0_33, %c0_34, %c0_35] : memref<1x2x8xf32, #tpu.memory_space<vmem>>, vector<1x2x8xf32>
    %42 = vector.shape_cast %41 : vector<1x2x8xf32> to vector<2x8xf32>
    %43 = vector.shape_cast %40 : vector<2x8xf32> to vector<1x2x8xf32>
    tpu.vector_store %arg5[%c0_33, %c0_34, %c0_35], %43 {strides = array<i32>} : memref<1x2x8xf32, #tpu.memory_space<vmem>>, vector<1x2x8xf32>,
    %44 = tpu.transpose %33, [1, 0] : vector<64x128xf32> -> vector<128x64xf32>
    %45 = vector.extract_strided_slice %44 {offsets = [0, 0], sizes = [8, 64], strides = [1, 1]} : vector<128x64xf32> to vector<8x64xf32>
    %c0_36 = arith.constant 0 : index
    %c0_37 = arith.constant 0 : index
    %c0_38 = arith.constant 0 : index
    %46 = vector.load %arg4[%c0_36, %c0_37, %c0_38] : memref<1x8x64xf32, #tpu.memory_space<vmem>>, vector<1x8x64xf32>
    %47 = vector.shape_cast %46 : vector<1x8x64xf32> to vector<8x64xf32>
    %48 = vector.shape_cast %45 : vector<8x64xf32> to vector<1x8x64xf32>
    tpu.vector_store %arg4[%c0_36, %c0_37, %c0_38], %48 {strides = array<i32>} : memref<1x8x64xf32, #tpu.memory_space<vmem>>, vector<1x8x64xf32>,
    return
  }
  func.func @transform_0(%arg0: i32) -> (i32, i32, i32, i32) {
    %c0_i32 = arith.constant 0 : i32
    %c0_i32_0 = arith.constant 0 : i32
    %c0_i32_1 = arith.constant 0 : i32
    %c0_i32_2 = arith.constant 0 : i32
    return %arg0, %c0_i32, %c0_i32_0, %c0_i32_1 : i32, i32, i32, i32
  }
  func.func @transform_1(%arg0: i32) -> (i32, i32, i32) {
    %c0_i32 = arith.constant 0 : i32
    %c0_i32_0 = arith.constant 0 : i32
    %c0_i32_1 = arith.constant 0 : i32
    %c0_i32_2 = arith.constant 0 : i32
    return %c0_i32, %c0_i32_0, %c0_i32_1 : i32, i32, i32
  }
  func.func @transform_2(%arg0: i32) -> (i32, i32) {
    %c0_i32 = arith.constant 0 : i32
    %c0_i32_0 = arith.constant 0 : i32
    %c0_i32_1 = arith.constant 0 : i32
    return %c0_i32, %c0_i32_0 : i32, i32
  }
  func.func @transform_3(%arg0: i32) -> (i32, i32, i32) {
    %c0_i32 = arith.constant 0 : i32
    %c0_i32_0 = arith.constant 0 : i32
    %c0_i32_1 = arith.constant 0 : i32
    return %arg0, %c0_i32, %c0_i32_0 : i32, i32, i32
  }
  func.func @transform_4(%arg0: i32) -> (i32, i32, i32) {
    %c0_i32 = arith.constant 0 : i32
    %c0_i32_0 = arith.constant 0 : i32
    %c0_i32_1 = arith.constant 0 : i32
    return %arg0, %c0_i32, %c0_i32_0 : i32, i32, i32
  }
}

</mosaic_0001>

<bundles_post_ra>
// kernel: tpu_custom_call.1
= control target key start
LH: loop header
LB: loop body
LE: loop exit
PB: predicated region body
PF: predicated region fallthrough
CT: control target
= control target key end

     0   :  { %10 = vsyncpa [#allocation3], 0  ;;  %s1630_s0 = inlined_call_operand.vmem [shape: f32[2,9,9,16], index: 0, kind: input, shape index: {}]   ;;  %s1631_s1 = inlined_call_operand.vmem [shape: f32[4,16,128], index: 1, kind: input, shape index: {}]   ;;  %s1632_s2 = inlined_call_operand.vmem [shape: f32[1,128], index: 2, kind: input, shape index: {}]   ;;  %s1633_s3 = inlined_call_operand.hbm [shape: f32[2,8,64], index: 3, kind: output, shape index: {0}]   ;;  %s1634_s4 = inlined_call_operand.hbm [shape: f32[2,2,8], index: 4, kind: output, shape index: {1}]  }
   0x1   :  { %12 = vsyncpa [#allocation3 + $0x1], 0 }
   0x2   :  { %13 = vsyncpa [#allocation5], 0 }
   0x3   :  { %15 = vsyncpa [#allocation5 + $0x1], 0  ;;  %s1400_s15 = smov 0   ;;  %s1402_s16 = smov 0  }
   0x4   :  { %s1404_s17 = smov 0   ;;  %s1406_s18 = smov 0  }
   0x5 LB: > { %s1421_s19 = sadd.s32 4294967295, %s1371_s18   ;;  %s1019_s20 = sadd.s32 4294967294, %s1371_s18   ;;  %s1371_s18 = sphi %s1406_s18, %s1640_s18   ;;  %s1367_s17 = sphi %s1404_s17, %s1639_s17   ;;  %s1363_s16 = sphi %s1402_s16, %s1638_s16   ;;  %s1359_s15 = sphi %s1400_s15, %s1637_s15  }
   0x6   : > { %s1425_s21 = sadd.s32 1, %s1371_s18   ;;  %s96_s22 = sadd.s32 1, %s1367_s17 }
   0x7   : > { %s93_s23 = ssub.s32 %s1371_s18, %s1425_s21  ;;  %p106_p0 = scmp.ne.s32.totalorder %s1367_s17, %s1363_s16 }
   0x8   : > { %p94_p1 = scmp.eq.s32.totalorder %s93_s23, 0  ;;  %p107_p2 = scmp.eq.s32.totalorder %s1421_s19, 1 }
   0x9   : > { %p112_p3 = scmp.ne.s32.totalorder %s1363_s16, %s1359_s15  ;;  %p113_p4 = scmp.eq.s32.totalorder %s1019_s20, 1 }
   0xa   : > { %s1436_s24 = scalar_select %p94_p1, %s1367_s17, %s96_s22  }
   0xb   : > { %p1438_p5 = por %p107_p2, %p106_p0  ;;  %p1442_p6 = por %p113_p4, %p112_p3 }
   0xc   : > { %p1022_p7 = scmp.ge.s32.totalorder %s1371_s18, 1  ;;  %p171_p8 = scmp.lt.s32.totalorder %s1371_s18, 3 }
   0xe   : > { %p172_p9 = pnand %p1022_p7, %p171_p8 }
   0xf   : > { %v1026_v0 = vld [vmem:[%s1631_s1 + $0x10] sm:$0xff] (!%p172_p9)  ;;  %v1027_v1 = vld [vmem:[%s1631_s1 + $0x18] sm:$0xff] (!%p172_p9)  ;;  %v1052_v2 = vld [vmem:[%s1631_s1 + $0x20] sm:$0xff] (!%p172_p9)  ;;  %p202_p10 = scmp.lt.s32.totalorder (!%p172_p9), %s1421_s19, 1  ;;  %vm228_vm0 = vcmask (!%p172_p9), 130048   ;;  %vm807_vm1 = vcmask (!%p172_p9), 64512  }
  0x10   : > { %175 = sbr.rel (%p172_p9) target bundleno = 408 (0x198), region = 32  ;;  %v1191_v3 = vpack.c.bf16 (!%p172_p9), %v1027_v1, %v1026_v0  ;;  %v1053_v4 = vld [vmem:[%s1631_s1 + $0x28] sm:$0xff] (!%p172_p9)  ;;  %v215_v5 = vld [vmem:[%s1631_s1] sm:$0xff] (!%p172_p9)  ;;  %v1070_v9 = vld [vmem:[%s1631_s1 + $0x30] sm:$0xff] (!%p172_p9)  ;;  %s1549_s7 = sand.u32 (!%p172_p9), 1, %s1363_s16   ;;  %vm858_vm2 = vcmask (!%p172_p9), 1040384  }
  0x11   : > { %v216_v6 = vld [vmem:[%s1631_s1 + $0x8] sm:$0xff] (!%p172_p9)  ;;  %v1199_v7 = vpack.c.bf16 (!%p172_p9), %v1053_v4, %v1052_v2  ;;  %v1071_v10 = vld [vmem:[%s1631_s1 + $0x38] sm:$0xff] (!%p172_p9)  ;;  %v1080_v32 = vld [vmem:[%s1632_s2] ss:$0 sm:$0xff] (!%p172_p9)  ;;  %s1024_s8 = sshll.u32 (!%p172_p9), %s1549_s7, 1  ;;  %s1084_s9 = sshll.u32 (!%p172_p9), %s1421_s19, 5 }
  0x12   : > { %v1195_v8 = vpack.c.bf16 (!%p172_p9), %v216_v6, %v215_v5  ;;  %1192 = vmatprep.subr.bf16.mxu1 (!%p172_p9), %v1191_v3  ;;  %v1203_v11 = vpack.c.bf16 (!%p172_p9), %v1071_v10, %v1070_v9  ;;  %s201_s10 = scalar_lea.vmem (!%p172_p9), [#allocation4], %s1024_s8  ;;  %vm860_vm3 = vcmask (!%p172_p9), 58368   ;;  %s1556_s14 = scalar_lea.hbm (!%p172_p9), %s1634_s4, %s1084_s9 }
  0x13   : > { %1200 = vmatprep.subr.bf16.mxu0 (!%p172_p9), %v1199_v7  ;;  %1194 = vmatpush3.bf16.msra.mxu1 (!%p172_p9), %v1191_v3  ;;  %s928_s11 = sshll.u32 (!%p172_p9), %s201_s10, 4  ;;  %s902_s20 = scalar_lea.sflag (!%p172_p9), [#allocation5], %s1549_s7  ;;  %s1558_s11 = int_to_ptr.vmem [resolvable:$true] %s928_s11 }
  0x14   : > { %1202 = vmatpush3.bf16.msra.mxu0 (!%p172_p9), %v1199_v7  ;;  %1196 = vmatprep.subr.bf16.mxu1 (!%p172_p9), %v1195_v8  ;;  %s1277_s22 = scalar_lea.vmem (!%p172_p9), %s1558_s11, 32  ;;  %s1373_s23 = smov (!%p172_p9), [#allocation4]  }
  0x15   : > { %1204 = vmatprep.subr.bf16.mxu0 (!%p172_p9), %v1203_v11  ;;  %p1278_p11 = scmp.ne.s32.totalorder (!%p172_p9), %s1558_s11, %s1277_s22 }
  0x17   : > { %s203_s13 = scalar_select %p202_p10, %s1421_s19, 1 }
  0x18   : > { %p1279_p12 = pnand %p1278_p11, %p1438_p5 }
  0x19   : > { %s1231_s27 = smul.u32 144, %s203_s13 }
  0x1a   : > { %p1280_p13 = pneg %p1279_p12 }
  0x1b   : > { %s1477_s30 = scalar_lea.vmem %s1630_s0, %s1231_s27  ;;  %s1281_s27 = sshll.u32 %s1373_s23, 4  ;;  %s1282_s27 = int_to_ptr.vmem [resolvable:$false] %s1281_s27 }
  0x1c   : > { %v217_v12 = vld [vmem:[%s1477_s30 + $0x1] sm:$0xff]  ;;  %v1044_v13 = vld [vmem:[%s1477_s30 + $0x10] sm:$0xff]  ;;  %s1283_s28 = scalar_lea.vmem %s1282_s27, 64  ;;  %p1284_p0 = scmp.lt.s32.totalorder %s1558_s11, %s1282_s27 }
  0x1d   : > { %v218_v14 = vld [vmem:[%s1477_s30 + $0x11] sm:$0xff]  ;;  %1131 = vmatprep.mubr.msk.f32.mxu1 %vm228_vm0, %v217_v12  ;;  %1163 = vmatprep.mubr.msk.f32.mxu0 %vm228_vm0, %v1044_v13  ;;  %v1045_v15 = vld [vmem:[%s1477_s30 + $0x20] sm:$0xff]  ;;  %p1285_p1 = scmp.lt.s32.totalorder %s1283_s28, %s1277_s22 }
  0x1e   : > { %v219_v16 = vld [vmem:[%s1477_s30 + $0x21] sm:$0xff]  ;;  %v1046_v17 = vld [vmem:[%s1477_s30 + $0x30] sm:$0xff]  ;;  %1132 = vmatmul.mubr.msk.f32.vlgmr.msra.gmra.mrb[0].mxu1 %vm228_vm0, %v218_v14  ;;  %1164 = vmatmul.mubr.msk.f32.vlgmr.msra.gmra.mrb[0].mxu0 %vm228_vm0, %v1045_v15 }
  0x1f   : > { %1198 = vmatpush3.bf16.msra.mxu1 %v1195_v8  ;;  %1206 = vmatpush3.bf16.msra.mxu0 %v1203_v11  ;;  %v220_v18 = vld [vmem:[%s1477_s30 + $0x31] sm:$0xff]  ;;  %v1047_v19 = vld [vmem:[%s1477_s30 + $0x40] sm:$0xff]  ;;  %p1286_p2 = por %p1285_p1, %p1284_p0 }
  0x20   : > { %1134 = vmatprep.mubr.msk.f32.mxu1 %vm228_vm0, %v219_v16  ;;  %1166 = vmatprep.mubr.msk.f32.mxu0 %vm228_vm0, %v1046_v17  ;;  %v221_v20 = vld [vmem:[%s1477_s30 + $0x41] sm:$0xff]  ;;  %v1048_v21 = vld [vmem:[%s1477_s30 + $0x50] sm:$0xff] }
  0x21   : > { %v222_v22 = vld [vmem:[%s1477_s30 + $0x51] sm:$0xff]  ;;  %v1049_v23 = vld [vmem:[%s1477_s30 + $0x60] sm:$0xff]  ;;  %p1287_p3 = pnand %p1286_p2, %p1280_p13 }
  0x22   : > { %1135 = vmatmul.mubr.msk.f32.gmra.mrb[2].mxu1 %vm228_vm0, %v220_v18  ;;  %1167 = vmatmul.mubr.msk.f32.gmra.mrb[2].mxu0 %vm228_vm0, %v1047_v19  ;;  %v223_v24 = vld [vmem:[%s1477_s30 + $0x61] sm:$0xff]  ;;  %v1050_v25 = vld [vmem:[%s1477_s30 + $0x70] sm:$0xff] }
  0x23   : > { %1137 = vmatprep.mubr.msk.f32.mxu1 %vm228_vm0, %v221_v20  ;;  %1169 = vmatprep.mubr.msk.f32.mxu0 %vm228_vm0, %v1048_v21  ;;  %v224_v26 = vld [vmem:[%s1477_s30 + $0x71] sm:$0xff]  ;;  %v1051_v27 = vld [vmem:[%s1477_s30 + $0x80] sm:$0xff] }
  0x24   : > { %v207_v28 = vld [vmem:[%s1477_s30] sm:$0xff] }
  0x25   : > { %v1069_v29 = vld [vmem:[%s1477_s30 + $0x81] sm:$0xff] }
  0x26   : > { %1138 = vmatmul.mubr.msk.f32.gmra.mrb[4].mxu1 %vm228_vm0, %v222_v22  ;;  %1170 = vmatmul.mubr.msk.f32.gmra.mrb[4].mxu0 %vm228_vm0, %v1049_v23 }
  0x27   : > { %1140 = vmatprep.mubr.msk.f32.mxu1 %vm228_vm0, %v223_v24  ;;  %1172 = vmatprep.mubr.msk.f32.mxu0 %vm228_vm0, %v1050_v25 }
  0x2a   : > { %1141 = vmatmul.mubr.msk.f32.gmra.mrb[6].mxu1 %vm228_vm0, %v224_v26  ;;  %1173 = vmatmul.mubr.msk.f32.gmra.mrb[6].mxu0 %vm228_vm0, %v1051_v27 }
  0x2b   : > { %1147 = vmatprep.mubr.msk.f32.mxu1 %vm228_vm0, %v207_v28  ;;  %1179 = vmatprep.mubr.msk.f32.mxu0 %vm228_vm0, %v218_v14 }
  0x2e   : > { %1148 = vmatmul.mubr.msk.f32.vlgmr.msra.gmra.mrb[0].mxu1 %vm228_vm0, %v1044_v13  ;;  %1180 = vmatmul.mubr.msk.f32.vlgmr.msra.gmra.mrb[0].mxu0 %vm228_vm0, %v219_v16 }
  0x2f   : > { %1150 = vmatprep.mubr.msk.f32.mxu1 %vm228_vm0, %v1045_v15  ;;  %1182 = vmatprep.mubr.msk.f32.mxu0 %vm228_vm0, %v220_v18 }
  0x32   : > { %1151 = vmatmul.mubr.msk.f32.gmra.mrb[2].mxu1 %vm228_vm0, %v1046_v17  ;;  %1183 = vmatmul.mubr.msk.f32.gmra.mrb[2].mxu0 %vm228_vm0, %v221_v20 }
  0x33   : > { %1153 = vmatprep.mubr.msk.f32.mxu1 %vm228_vm0, %v1047_v19  ;;  %1185 = vmatprep.mubr.msk.f32.mxu0 %vm228_vm0, %v222_v22 }
  0x36   : > { %1154 = vmatmul.mubr.msk.f32.gmra.mrb[4].mxu1 %vm228_vm0, %v1048_v21  ;;  %1186 = vmatmul.mubr.msk.f32.gmra.mrb[4].mxu0 %vm228_vm0, %v223_v24 }
  0x37   : > { %1156 = vmatprep.mubr.msk.f32.mxu1 %vm228_vm0, %v1049_v23  ;;  %1188 = vmatprep.mubr.msk.f32.mxu0 %vm228_vm0, %v224_v26 }
  0x3a   : > { %1157 = vmatmul.mubr.msk.f32.gmra.mrb[6].mxu1 %vm228_vm0, %v1050_v25  ;;  %1189 = vmatmul.mubr.msk.f32.gmra.mrb[6].mxu0 %vm228_vm0, %v1069_v29 }
 0x101   : > { %v1149_v30 = vpop.f32.mrb[0].mxu1  ;;  %v1181_v31 = vpop.f32.mrb[0].mxu0 }
 0x102   : > { %v1207_v33 = vadd.f32 %v1181_v31, %v1149_v30  ;;  %v448_v34 = vpop.f32.mrb[1].mxu1  ;;  %v737_v35 = vpop.f32.mrb[1].mxu0 }
 0x103   : > { %v1208_v36 = vadd.f32 %v737_v35, %v448_v34 }
 0x104   : > { %v792_v37 = vadd.f32 %v1207_v33, %v1080_v32 }
 0x105   : > { %v791_v38 = vadd.f32 %v1208_v36, %v1080_v32  ;;  %v1152_v39 = vpop.f32.mrb[2].mxu1  ;;  %v1184_v40 = vpop.f32.mrb[2].mxu0 }
 0x106   : > { %v800_v41 = vmax.f32 %v792_v37, 0.0  ;;  %v1209_v42 = vadd.f32 %v1184_v40, %v1152_v39  ;;  %v458_v43 = vpop.f32.mrb[3].mxu1  ;;  %v747_v44 = vpop.f32.mrb[3].mxu0 }
 0x107   : > { %v799_v45 = vmax.f32 %v791_v38, 0.0  ;;  %v1210_v46 = vadd.f32 %v747_v44, %v458_v43 }
 0x108   : > { %v809_v47 = vsel %vm807_vm1, %v800_v41, 0.0  ;;  %v830_v48 = vmul.f32 %v800_v41, %v800_v41  ;;  %v794_v49 = vadd.f32 %v1209_v42, %v1080_v32 }
 0x109   : > { %v808_v50 = vsel %vm807_vm1, %v799_v45, 0.0  ;;  %v829_v51 = vmul.f32 %v799_v45, %v799_v45  ;;  %v793_v52 = vadd.f32 %v1210_v46, %v1080_v32  ;;  %v1187_v53 = vpop.f32.mrb[4].mxu0  ;;  %862 = vxpose.xlu0.b32.start [1/8] (short) (narrow) %v799_v45, 8  ;;  %v1155_v54 = vpop.f32.mrb[4].mxu1 }
 0x10a   : > { %v838_v55 = vsel %vm807_vm1, %v830_v48, 0.0  ;;  %v810_v56 = vadd.f32 %v809_v47, %v808_v50  ;;  %v802_v57 = vmax.f32 %v794_v49, 0.0  ;;  %v1211_v58 = vadd.f32 %v1187_v53, %v1155_v54  ;;  %v468_v59 = vpop.f32.mrb[5].mxu1  ;;  %v757_v60 = vpop.f32.mrb[5].mxu0 }
 0x10b   : > { %v837_v61 = vsel %vm807_vm1, %v829_v51, 0.0  ;;  %v801_v62 = vmax.f32 %v793_v52, 0.0  ;;  %v1212_v63 = vadd.f32 %v757_v60, %v468_v59 }
 0x10c   : > { %v839_v0 = vadd.f32 %v838_v55, %v837_v61  ;;  %v832_v1 = vmul.f32 %v802_v57, %v802_v57  ;;  %v796_v2 = vadd.f32 %v1211_v58, %v1080_v32  ;;  %v813_v13 = vsel %vm807_vm1, %v802_v57, 0.0 }
 0x10d   : > { %v811_v3 = vsel %vm807_vm1, %v801_v62, 0.0  ;;  %v831_v4 = vmul.f32 %v801_v62, %v801_v62  ;;  %v795_v5 = vadd.f32 %v1212_v63, %v1080_v32  ;;  %v1190_v6 = vpop.f32.mrb[6].mxu0  ;;  %863 = vxpose.xlu0.b32.cont [2/8] (short) (narrow) %v800_v41, 8  ;;  %v1158_v7 = vpop.f32.mrb[6].mxu1 }
 0x10e   : > { %v812_v8 = vadd.f32 %v811_v3, %v810_v56  ;;  %v804_v9 = vmax.f32 %v796_v2, 0.0  ;;  %v1213_v10 = vadd.f32 %v1190_v6, %v1158_v7  ;;  %v478_v11 = vpop.f32.mrb[7].mxu1  ;;  %v767_v12 = vpop.f32.mrb[7].mxu0  ;;  %v842_v17 = vsel %vm807_vm1, %v832_v1, 0.0 }
 0x10f   : > { %v840_v14 = vsel %vm807_vm1, %v831_v4, 0.0  ;;  %v803_v15 = vmax.f32 %v795_v5, 0.0  ;;  %v1214_v16 = vadd.f32 %v767_v12, %v478_v11 }
 0x110   : > { %v841_v18 = vadd.f32 %v840_v14, %v839_v0  ;;  %v834_v19 = vmul.f32 %v804_v9, %v804_v9  ;;  %v814_v20 = vadd.f32 %v813_v13, %v812_v8  ;;  %v798_v23 = vadd.f32 %v1213_v10, %v1080_v32 }
 0x111   : > { %v815_v21 = vsel %vm807_vm1, %v803_v15, 0.0  ;;  %v833_v22 = vmul.f32 %v803_v15, %v803_v15  ;;  %v797_v24 = vadd.f32 %v1214_v16, %v1080_v32  ;;  %864 = vxpose.xlu0.b32.cont [3/8] (short) (narrow) %v801_v62, 8  ;;  %v817_v27 = vsel %vm807_vm1, %v804_v9, 0.0 }
 0x112   : > { %v816_v25 = vadd.f32 %v815_v21, %v814_v20  ;;  %v843_v26 = vadd.f32 %v842_v17, %v841_v18  ;;  %v806_v29 = vmax.f32 %v798_v23, 0.0  ;;  %v846_v34 = vsel %vm807_vm1, %v834_v19, 0.0 }
 0x113   : > { %v844_v28 = vsel %vm807_vm1, %v833_v22, 0.0  ;;  %v805_v30 = vmax.f32 %v797_v24, 0.0 }
 0x114   : > { %v845_v31 = vadd.f32 %v844_v28, %v843_v26  ;;  %v818_v33 = vadd.f32 %v817_v27, %v816_v25  ;;  %v836_v35 = vmul.f32 %v806_v29, %v806_v29  ;;  %v821_v39 = vsel %vm807_vm1, %v806_v29, 0.0 }
 0x115   : > { %v819_v36 = vsel %vm807_vm1, %v805_v30, 0.0  ;;  %v835_v37 = vmul.f32 %v805_v30, %v805_v30  ;;  %865 = vxpose.xlu0.b32.cont [4/8] (short) (narrow) %v802_v57, 8 }
 0x116   : > { %v820_v32 = vadd.f32 %v819_v36, %v818_v33  ;;  %v847_v38 = vadd.f32 %v846_v34, %v845_v31  ;;  %v850_v43 = vsel %vm807_vm1, %v836_v35, 0.0 }
 0x117   : > { %v848_v40 = vsel %vm807_vm1, %v835_v37, 0.0 }
 0x118   : > { %v822_v41 = vadd.f32 %v821_v39, %v820_v32  ;;  %v849_v42 = vadd.f32 %v848_v40, %v847_v38 }
 0x119   : > { %866 = vxpose.xlu0.b32.cont [5/8] (short) (narrow) %v803_v15, 8 }
 0x11a   : > { %v823_v44 = vrot.slane %v822_v41, 4  ;;  %v851_v45 = vadd.f32 %v850_v43, %v849_v42 }
 0x11c   : > { %v824_v46 = vadd.f32 %v823_v44, %v822_v41  ;;  %v852_v47 = vrot.slane %v851_v45, 4 }
 0x11d   : > { %867 = vxpose.xlu0.b32.cont [6/8] (short) (narrow) %v804_v9, 8 }
 0x11e   : > { %v825_v48 = vrot.slane %v824_v46, 2  ;;  %v853_v49 = vadd.f32 %v852_v47, %v851_v45 }
 0x120   : > { %v826_v50 = vadd.f32 %v825_v48, %v824_v46  ;;  %v854_v51 = vrot.slane %v853_v49, 2 }
 0x121   : > { %868 = vxpose.xlu0.b32.cont [7/8] (short) (narrow) %v805_v30, 8 }
 0x122   : > { %v827_v52 = vrot.slane %v826_v50, 1  ;;  %v855_v53 = vadd.f32 %v854_v51, %v853_v49 }
 0x124   : > { %v856_v54 = vrot.slane %v855_v53, 1  ;;  %v828_v55 = vadd.f32 %v827_v52, %v826_v50 }
 0x125   : > { %869 = vxpose.xlu0.b32.end [8/8] (short) (narrow) %v806_v29, 8 }
 0x126   : > { %v857_v56 = vadd.f32 %v856_v54, %v855_v53 }
 0x128   : > { %v859_v57 = vsel %vm858_vm2, %v828_v55, %v857_v56 }
 0x129   : > { %861 = vst.msk [vmem:[%s201_s10] sm:$0x3] %vm860_vm3, %v859_v57 }
 0x12a   : > { %1290 = shalt.err (!%p1287_p3)
}
 0x12b   : > { %s1291_s29 = scalar_lea.hbm %s1556_s14, 32  ;;  %s1295_s6 = scalar_lea.hbm %s1634_s4, 64 }
 0x12c   : > { %p1292_p4 = scmp.ne.s32.totalorder %s1556_s14, %s1291_s29  ;;  %p1296_p9 = scmp.lt.u32.totalorder %s1556_s14, %s1634_s4 }
 0x12d   : > { %p1297_p10 = scmp.lt.u32.totalorder %s1295_s6, %s1291_s29  ;;  %p1299_p12 = scmp.lt.u32.totalorder %s1291_s29, %s1556_s14 }
 0x12e   : > { %p1293_p7 = pnand %p1292_p4, %p1438_p5 }
 0x12f   : > { %p1298_p11 = por %p1297_p10, %p1296_p9 }
 0x130   : > { %p1294_p8 = pneg %p1293_p7 }
 0x131   : > { %p1300_p13 = por %p1299_p12, %p1298_p11 }
 0x133   : > { %p1301_p0 = pnand %p1300_p13, %p1294_p8 }
 0x135   : > { %1304 = shalt.err (!%p1301_p0)
}
 0x136   : > { %1233 = dma.vmem_to_hbm [thread:$0]  (%p1438_p5), %s1558_s11, 32, %s1556_s14, %s902_s20   ;;  %vm894_vm4 = vcmask 523264  }
 0x137   : > { %s1023_s10 = sshll.u32 %s1549_s7, 3  ;;  %s1083_s12 = sshll.u32 %s1421_s19, 7 }
 0x138   : > { %s194_s13 = scalar_lea.vmem [#allocation2], %s1023_s10  ;;  %s1587_s28 = scalar_lea.hbm %s1633_s3, %s1083_s12 }
 0x139   : > { %s915_s22 = sshll.u32 %s194_s13, 4  ;;  %s897_s29 = scalar_lea.sflag [#allocation3], %s1549_s7  ;;  %s1589_s22 = int_to_ptr.vmem [resolvable:$true] %s915_s22 }
 0x13a   : > { %s1305_s30 = scalar_lea.vmem %s1589_s22, 128  ;;  %s1374_s19 = smov [#allocation2]  }
 0x13b   : > { %p1306_p1 = scmp.ne.s32.totalorder %s1589_s22, %s1305_s30  ;;  %s1309_s11 = sshll.u32 %s1374_s19, 4  ;;  %s1310_s11 = int_to_ptr.vmem [resolvable:$false] %s1309_s11 }
 0x13c   : > { %s1311_s14 = scalar_lea.vmem %s1310_s11, 256  ;;  %p1312_p4 = scmp.lt.s32.totalorder %s1589_s22, %s1310_s11 }
 0x13d   : > { %p1307_p2 = pnand %p1306_p1, %p1438_p5  ;;  %p1313_p7 = scmp.lt.s32.totalorder %s1311_s14, %s1305_s30 }
 0x13f   : > { %p1308_p3 = pneg %p1307_p2  ;;  %p1314_p8 = por %p1313_p7, %p1312_p4 }
 0x141   : > { %p1315_p9 = pnand %p1314_p8, %p1308_p3 }
 0x189   : > { %v878_v58 = vpop.trf.xlu0 }
 0x18a   : > { %895 = vst.msk [vmem:[%s194_s13] sm:$0xff] %vm894_vm4, %v878_v58 }
 0x18b   : > { %1318 = shalt.err (!%p1315_p9)
}
 0x18c   : > { %s1319_s7 = scalar_lea.hbm %s1587_s28, 128  ;;  %s1323_s6 = scalar_lea.hbm %s1633_s3, 256 }
 0x18d   : > { %p1320_p10 = scmp.ne.s32.totalorder %s1587_s28, %s1319_s7  ;;  %p1324_p13 = scmp.lt.u32.totalorder %s1587_s28, %s1633_s3 }
 0x18e   : > { %p1325_p0 = scmp.lt.u32.totalorder %s1323_s6, %s1319_s7  ;;  %p1327_p2 = scmp.lt.u32.totalorder %s1319_s7, %s1587_s28 }
 0x18f   : > { %p1321_p11 = pnand %p1320_p10, %p1438_p5 }
 0x190   : > { %p1326_p1 = por %p1325_p0, %p1324_p13 }
 0x191   : > { %p1322_p12 = pneg %p1321_p11 }
 0x192   : > { %p1328_p3 = por %p1327_p2, %p1326_p1 }
 0x194   : > { %p1329_p4 = pnand %p1328_p3, %p1322_p12 }
 0x196   : > { %1332 = shalt.err (!%p1329_p4)
}
 0x197   : > { %1232 = dma.vmem_to_hbm [thread:$0]  (%p1438_p5), %s1589_s22, 128, %s1587_s28, %s897_s29  }
 0x198 PF: > { %p1243_p7 = scmp.ge.s32.totalorder %s1371_s18, 2  ;;  %s940_s10 = sand.u32 1, %s1359_s15  }
 0x199   : > { %s941_s12 = scalar_lea.sflag [#allocation3], %s940_s10 }
 0x19a   : > { %p1237_p8 = pnand %p1243_p7, %p1442_p6 }
 0x19c   : > { %1350 = dma.done.wait (!%p1237_p8), %s941_s12, 128  }
 0x19d   : > { %1352 = vsyncadd (!%p1237_p8), %s941_s12, 4294967168  ;;  %s950_s13 = scalar_lea.sflag [#allocation5], %s940_s10 }
 0x19e   : > { %1354 = dma.done.wait (!%p1237_p8), %s950_s13, 32  }
 0x19f   : > { %1356 = vsyncadd (!%p1237_p8), %s950_s13, 4294967264  ;;  %p18_p5 = scmp.ge.s32.totalorder %s1425_s21, 4   ;;  %s1637_s15 = smov %s1363_s16 }
 0x1a0   : > { %s1638_s16 = smov %s1367_s17  ;;  %s1639_s17 = smov %s1436_s24 }
 0x1a1   : > { %s1640_s18 = smov %s1425_s21  ;;  %20 = sbr.rel (!%p18_p5) target bundleno = 5 (0x5), region = 88 }
 0x1a8   :  { %955 = vsyncpa [#allocation3], 1 }
 0x1a9   :  { %957 = vsyncpa [#allocation3 + $0x1], 1 }
 0x1aa   :  { %958 = vsyncpa [#allocation5], 1 }
 0x1ab   :  { %960 = vsyncpa [#allocation5 + $0x1], 1 }

</bundles_post_ra>
